<compile_context>
chip_gen: v5e
topology: v5e:2x2
jax: 0.10.0
libtpu: 0.0.40
codegen_flags: <defaults>
</compile_context>

<pallas_src>
import functools

import jax
import jax.numpy as jnp
from jax.experimental import pallas as pl
from jax.experimental.pallas import tpu as pltpu


_SUBLANE = 16   # bf16 rows per sublane-packed vreg
_MXU_M = 256    # MXU M granularity on v6e/v7x (also a multiple of v5e's 128)
_LANE = 128


def _round_up(x, m):
    return (x + m - 1) // m * m


def _tpu_vmem_capacity_bytes():
    """Generation-aware VMEM size (v5e/v6e: 128 MiB, v7x: 64 MiB per TC)."""
    try:
        info = pltpu.get_tpu_info()
        cap = getattr(info, "vmem_capacity_bytes", None)
        if cap:
            return int(cap)
    except Exception:
        pass
    return 64 << 20  # conservative default that is legal on every generation


def _pick_batch_tile(batch, tile_b):
    """Batch tile: multiple of 16 (bf16 sublane packing); >=2 grid steps when
    the batch allows (so v7x's two TensorCores both get work); multiples of
    the MXU M granularity (256) for large batches."""
    if batch <= _SUBLANE:
        tb = _SUBLANE
    elif batch <= 2 * tile_b:
        tb = _round_up(pl.cdiv(batch, 2), _SUBLANE)
    else:
        tb = _round_up(tile_b, _MXU_M)
    b_pad = _round_up(batch, tb)
    return tb, b_pad


def _mlp_kernel(x_ref, wt_ref, b_ref, wot_ref, bo_ref, o_ref, *, n_layer):
    """One batch tile of the MLP.

    x_ref   : (TB, H_pad)        bf16 input tile
    wt_ref  : (L, H_pad, H_pad)  hidden weights, (in, out) layout, bf16
    b_ref   : (L, 1, H_pad)      hidden biases, f32
    wot_ref : (H_pad, O_pad)     output weights, (in, out) layout, bf16
    bo_ref  : (1, O_pad)         output bias, f32
    o_ref   : (TB, O_pad)        f32 output tile (lane-dense store)
    """
    x = x_ref[...]                                    # bf16 activations
    for i in range(n_layer):                          # static unroll over layers
        h = jnp.dot(x, wt_ref[i], preferred_element_type=jnp.float32)
        h = jnp.maximum(h + b_ref[i], 0.0)            # f32 bias + ReLU
        x = h.astype(x_ref.dtype)                     # single downcast per layer
    out = jnp.dot(x, wot_ref[...], preferred_element_type=jnp.float32)
    o_ref[...] = (out + bo_ref[...]).astype(o_ref.dtype)


def prepare_funcsgru_params(lin_w, lin_b, out_w, out_b, *,
                            compute_dtype=jnp.bfloat16, lane=_LANE):
    """One-time parameter prep (do at model load, not per forward call).

    lin_w: (L, H, H) torch-style (out, in); lin_b: (L, H);
    out_w: (O, H) torch-style; out_b: (O,).
    All weights are transposed to (in, out), cast to bf16 and lane-padded to
    multiples of 128 so every matmul tile is lane-dense.
    """
    L, H, _ = lin_w.shape
    O = out_w.shape[0]
    H_pad = _round_up(H, lane)
    O_pad = _round_up(O, lane)

    wt = jnp.zeros((L, H_pad, H_pad), compute_dtype).at[:, :H, :H].set(
        jnp.transpose(lin_w, (0, 2, 1)).astype(compute_dtype))
    b = jnp.zeros((L, 1, H_pad), jnp.float32).at[:, :, :H].set(
        lin_b.reshape(L, 1, H).astype(jnp.float32))
    wot = jnp.zeros((H_pad, O_pad), compute_dtype).at[:H, :O].set(
        out_w.T.astype(compute_dtype))
    bo = jnp.zeros((1, O_pad), jnp.float32).at[:, :O].set(
        out_b.astype(jnp.float32))
    return {"wt": wt, "b": b, "wot": wot, "bo": bo, "in_dim": H, "out_dim": O}


def _make_in_specs(L, H_pad, O_pad, tb, single_buffer_weights):
    # Grid-invariant parameter blocks: constant index_map => DMA'd once.
    # Buffered(1) drops the unused second VMEM buffer for each of them.
    kw = {"pipeline_mode": pl.Buffered(1)} if single_buffer_weights else {}
    return [
        pl.BlockSpec((tb, H_pad), lambda i: (i, 0)),
        pl.BlockSpec((L, H_pad, H_pad), lambda i: (0, 0, 0), **kw),
        pl.BlockSpec((L, 1, H_pad), lambda i: (0, 0, 0), **kw),
        pl.BlockSpec((H_pad, O_pad), lambda i: (0, 0), **kw),
        pl.BlockSpec((1, O_pad), lambda i: (0, 0), **kw),
    ]


def funcsgru_pallas(x, params, *, tile_b=256, single_buffer_weights=True):
    """x: (B, H) float array. params from prepare_funcsgru_params. Returns (B, O) f32."""
    wt, b, wot, bo = params["wt"], params["b"], params["wot"], params["bo"]
    H, O = params["in_dim"], params["out_dim"]
    cdt = wt.dtype
    B, H_in = x.shape
    if H_in != H:
        raise ValueError(f"expected feature dim {H}, got {H_in}")
    L, H_pad, _ = wt.shape
    O_pad = wot.shape[1]

    tb, B_pad = _pick_batch_tile(B, tile_b)
    grid = (B_pad // tb,)

    # Lane-pad features to H_pad, zero-pad batch to a tile multiple, and cast
    # activations to bf16 once here (halves input DMA / VMEM; f32 accumulation
    # inside the kernel keeps numerics).  Padded columns stay exactly zero
    # through every layer (zero weights + zero bias), so results are unchanged.
    x_p = jnp.zeros((B_pad, H_pad), cdt).at[:B, :H].set(x.astype(cdt))

    kernel = functools.partial(_mlp_kernel, n_layer=L)
    vmem_cap = (3 * _tpu_vmem_capacity_bytes()) // 4  # headroom for compiler scratch

    def run(single_buf):
        w_bufs = 1 if single_buf else 2
        wb = jnp.dtype(cdt).itemsize
        need = (2 * tb * H_pad * wb                               # input tile (double-buffered)
                + 2 * tb * O_pad * 4                              # f32 output tile (double-buffered)
                + w_bufs * (L * H_pad * H_pad + H_pad * O_pad) * wb
                + w_bufs * (L * 8 * H_pad + 8 * O_pad) * 4)       # f32 biases (sublane-padded)
        if need > vmem_cap:
            # TODO(synk): per-layer / K-tiled weight pipeline for configs whose
            # full weight block exceeds VMEM (esp. v7x's 64 MiB per TC).
            raise ValueError(
                f"funcsgru working set ({need >> 20} MiB) exceeds the VMEM "
                f"budget ({vmem_cap >> 20} MiB); reduce H/L or add per-layer "
                f"weight tiling.")
        vmem_limit = int(min(max(need * 3 // 2, 16 << 20), vmem_cap))

        return pl.pallas_call(
            kernel,
            out_shape=jax.ShapeDtypeStruct((B_pad, O_pad), jnp.float32),
            grid=grid,
            in_specs=_make_in_specs(L, H_pad, O_pad, tb, single_buf),
            out_specs=pl.BlockSpec((tb, O_pad), lambda i: (i, 0)),
            compiler_params=pltpu.CompilerParams(
                dimension_semantics=("parallel",),
                vmem_limit_bytes=vmem_limit),
        )(x_p, wt, b, wot, bo)

    if single_buffer_weights:
        try:
            return jax.block_until_ready(run(True))[:B, :O]
        except Exception:
            # Fallback: some builds may reject Buffered(1) on top-level
            # pallas_call BlockSpecs; default double-buffering is still correct.
            pass
    return run(False)[:B, :O]


def funcsgru_ref(x, lin_w, lin_b, out_w, out_b, compute_dtype=jnp.bfloat16):
    """Pure-JAX reference emulating the kernel numerics: bf16 operands,
    f32 accumulation, f32 bias + ReLU, bf16 inter-layer activations."""
    h = x.astype(compute_dtype)
    for i in range(lin_w.shape[0]):
        a = jnp.dot(h, lin_w[i].T.astype(compute_dtype),
                    preferred_element_type=jnp.float32)
        h = jnp.maximum(a + lin_b[i].astype(jnp.float32), 0.0).astype(compute_dtype)
    out = jnp.dot(h, out_w.T.astype(compute_dtype),
                  preferred_element_type=jnp.float32)
    return out + out_b.astype(jnp.float32)


if __name__ == "__main__":
    # Small, deterministic config consistent with the module.
    n_layer = 2
    hidden_dim = 32
    output_dim = 16
    batch = 16

    key = jax.random.PRNGKey(0)
    kx, kw, kb, kow, kob = jax.random.split(key, 5)

    x = jax.random.normal(kx, (batch, hidden_dim), jnp.float32)
    # Deterministic "init" mimicking nn.Linear shapes (weight: (out, in)).
    lin_w = jax.random.normal(kw, (n_layer, hidden_dim, hidden_dim), jnp.float32) * 0.1
    lin_b = jax.random.normal(kb, (n_layer, hidden_dim), jnp.float32) * 0.1
    out_w = jax.random.normal(kow, (output_dim, hidden_dim), jnp.float32) * 0.1
    out_b = jax.random.normal(kob, (output_dim,), jnp.float32) * 0.1

    params = prepare_funcsgru_params(lin_w, lin_b, out_w, out_b)

    y = funcsgru_pallas(x, params)
    y = jax.block_until_ready(y)

    y_ref = funcsgru_ref(x, lin_w, lin_b, out_w, out_b)
    assert y.shape == (batch, output_dim), y.shape
    assert jnp.allclose(y, y_ref, atol=1e-2, rtol=1e-2), "mismatch vs reference"

    print("KERNEL_OK")
</pallas_src>

<mosaic_0001>
module attributes {stable_mosaic.version = 11 : i64} {
  func.func @_mlp_kernel(%arg0: i32, %arg1: memref<16x128xbf16, #tpu.memory_space<vmem>>, %arg2: memref<2x128x128xbf16, #tpu.memory_space<vmem>>, %arg3: memref<2x1x128xf32, #tpu.memory_space<vmem>>, %arg4: memref<128x128xbf16, #tpu.memory_space<vmem>>, %arg5: memref<1x128xf32, #tpu.memory_space<vmem>>, %arg6: memref<16x128xf32, #tpu.memory_space<vmem>>) attributes {dimension_semantics = [#tpu.dimension_semantics<parallel>], iteration_bounds = array<i64: 1>, scalar_prefetch = 0 : i64, scratch_operands = 0 : i64, tpu.core_type = #tpu.core_type<tc>, window_params = [{transform_indices = @transform_0, window_bounds = array<i64: 16, 128>}, {pipeline_mode = #tpu.pipeline_mode<synchronous>, transform_indices = @transform_1, window_bounds = array<i64: 2, 128, 128>}, {pipeline_mode = #tpu.pipeline_mode<synchronous>, transform_indices = @transform_2, window_bounds = array<i64: 2, 1, 128>}, {pipeline_mode = #tpu.pipeline_mode<synchronous>, transform_indices = @transform_3, window_bounds = array<i64: 128, 128>}, {pipeline_mode = #tpu.pipeline_mode<synchronous>, transform_indices = @transform_4, window_bounds = array<i64: 1, 128>}, {transform_indices = @transform_5, window_bounds = array<i64: 16, 128>}]} {
    %c0 = arith.constant 0 : index
    %c0_0 = arith.constant 0 : index
    %0 = vector.load %arg1[%c0, %c0_0] : memref<16x128xbf16, #tpu.memory_space<vmem>>, vector<16x128xbf16>
    %c0_1 = arith.constant 0 : index
    %c0_2 = arith.constant 0 : index
    %c0_3 = arith.constant 0 : index
    %1 = vector.load %arg2[%c0_1, %c0_2, %c0_3] : memref<2x128x128xbf16, #tpu.memory_space<vmem>>, vector<1x128x128xbf16>
    %2 = vector.shape_cast %1 : vector<1x128x128xbf16> to vector<128x128xbf16>
    %cst = arith.constant dense<0.000000e+00> : vector<16x128xf32>
    %3 = tpu.matmul %0, %2, %cst {dimension_numbers = #tpu.dot_dimension_numbers<[1], [0], [0], [1], [0, 0, 1, 1], [], []>} : vector<16x128xbf16>, vector<128x128xbf16>, vector<16x128xf32> -> vector<16x128xf32>
    %c0_4 = arith.constant 0 : index
    %c0_5 = arith.constant 0 : index
    %c0_6 = arith.constant 0 : index
    %4 = vector.load %arg3[%c0_4, %c0_5, %c0_6] : memref<2x1x128xf32, #tpu.memory_space<vmem>>, vector<1x1x128xf32>
    %5 = vector.shape_cast %4 : vector<1x1x128xf32> to vector<1x128xf32>
    %6 = vector.broadcast %5 : vector<1x128xf32> to vector<16x128xf32>
    %7 = arith.addf %3, %6 : vector<16x128xf32>
    %cst_7 = arith.constant 0.000000e+00 : f32
    %8 = vector.broadcast %cst_7 : f32 to vector<16x128xf32>
    %9 = arith.maximumf %7, %8 : vector<16x128xf32>
    %10 = arith.truncf %9 : vector<16x128xf32> to vector<16x128xbf16>
    %c1 = arith.constant 1 : index
    %c0_8 = arith.constant 0 : index
    %c0_9 = arith.constant 0 : index
    %11 = vector.load %arg2[%c1, %c0_8, %c0_9] : memref<2x128x128xbf16, #tpu.memory_space<vmem>>, vector<1x128x128xbf16>
    %12 = vector.shape_cast %11 : vector<1x128x128xbf16> to vector<128x128xbf16>
    %cst_10 = arith.constant dense<0.000000e+00> : vector<16x128xf32>
    %13 = tpu.matmul %10, %12, %cst_10 {dimension_numbers = #tpu.dot_dimension_numbers<[1], [0], [0], [1], [0, 0, 1, 1], [], []>} : vector<16x128xbf16>, vector<128x128xbf16>, vector<16x128xf32> -> vector<16x128xf32>
    %c1_11 = arith.constant 1 : index
    %c0_12 = arith.constant 0 : index
    %c0_13 = arith.constant 0 : index
    %14 = vector.load %arg3[%c1_11, %c0_12, %c0_13] : memref<2x1x128xf32, #tpu.memory_space<vmem>>, vector<1x1x128xf32>
    %15 = vector.shape_cast %14 : vector<1x1x128xf32> to vector<1x128xf32>
    %16 = vector.broadcast %15 : vector<1x128xf32> to vector<16x128xf32>
    %17 = arith.addf %13, %16 : vector<16x128xf32>
    %cst_14 = arith.constant 0.000000e+00 : f32
    %18 = vector.broadcast %cst_14 : f32 to vector<16x128xf32>
    %19 = arith.maximumf %17, %18 : vector<16x128xf32>
    %20 = arith.truncf %19 : vector<16x128xf32> to vector<16x128xbf16>
    %c0_15 = arith.constant 0 : index
    %c0_16 = arith.constant 0 : index
    %21 = vector.load %arg4[%c0_15, %c0_16] : memref<128x128xbf16, #tpu.memory_space<vmem>>, vector<128x128xbf16>
    %cst_17 = arith.constant dense<0.000000e+00> : vector<16x128xf32>
    %22 = tpu.matmul %20, %21, %cst_17 {dimension_numbers = #tpu.dot_dimension_numbers<[1], [0], [0], [1], [0, 0, 1, 1], [], []>} : vector<16x128xbf16>, vector<128x128xbf16>, vector<16x128xf32> -> vector<16x128xf32>
    %c0_18 = arith.constant 0 : index
    %c0_19 = arith.constant 0 : index
    %23 = vector.load %arg5[%c0_18, %c0_19] : memref<1x128xf32, #tpu.memory_space<vmem>>, vector<1x128xf32>
    %24 = vector.broadcast %23 : vector<1x128xf32> to vector<16x128xf32>
    %25 = arith.addf %22, %24 : vector<16x128xf32>
    %c0_20 = arith.constant 0 : index
    %c0_21 = arith.constant 0 : index
    %26 = vector.load %arg6[%c0_20, %c0_21] : memref<16x128xf32, #tpu.memory_space<vmem>>, vector<16x128xf32>
    tpu.vector_store %arg6[%c0_20, %c0_21], %25 {strides = array<i32>} : memref<16x128xf32, #tpu.memory_space<vmem>>, vector<16x128xf32>,
    return
  }
  func.func @transform_0(%arg0: i32) -> (i32, i32) {
    %c0_i32 = arith.constant 0 : i32
    %c0_i32_0 = arith.constant 0 : i32
    return %arg0, %c0_i32 : i32, i32
  }
  func.func @transform_1(%arg0: i32) -> (i32, i32, i32) {
    %c0_i32 = arith.constant 0 : i32
    %c0_i32_0 = arith.constant 0 : i32
    %c0_i32_1 = arith.constant 0 : i32
    %c0_i32_2 = arith.constant 0 : i32
    return %c0_i32, %c0_i32_0, %c0_i32_1 : i32, i32, i32
  }
  func.func @transform_2(%arg0: i32) -> (i32, i32, i32) {
    %c0_i32 = arith.constant 0 : i32
    %c0_i32_0 = arith.constant 0 : i32
    %c0_i32_1 = arith.constant 0 : i32
    %c0_i32_2 = arith.constant 0 : i32
    return %c0_i32, %c0_i32_0, %c0_i32_1 : i32, i32, i32
  }
  func.func @transform_3(%arg0: i32) -> (i32, i32) {
    %c0_i32 = arith.constant 0 : i32
    %c0_i32_0 = arith.constant 0 : i32
    %c0_i32_1 = arith.constant 0 : i32
    return %c0_i32, %c0_i32_0 : i32, i32
  }
  func.func @transform_4(%arg0: i32) -> (i32, i32) {
    %c0_i32 = arith.constant 0 : i32
    %c0_i32_0 = arith.constant 0 : i32
    %c0_i32_1 = arith.constant 0 : i32
    return %c0_i32, %c0_i32_0 : i32, i32
  }
  func.func @transform_5(%arg0: i32) -> (i32, i32) {
    %c0_i32 = arith.constant 0 : i32
    %c0_i32_0 = arith.constant 0 : i32
    return %arg0, %c0_i32 : i32, i32
  }
}

module attributes {stable_mosaic.version = 11 : i64} {
  func.func @_mlp_kernel(%arg0: i32, %arg1: memref<16x128xbf16, #tpu.memory_space<vmem>>, %arg2: memref<2x128x128xbf16, #tpu.memory_space<vmem>>, %arg3: memref<2x1x128xf32, #tpu.memory_space<vmem>>, %arg4: memref<128x128xbf16, #tpu.memory_space<vmem>>, %arg5: memref<1x128xf32, #tpu.memory_space<vmem>>, %arg6: memref<16x128xf32, #tpu.memory_space<vmem>>) attributes {dimension_semantics = [#tpu.dimension_semantics<parallel>], iteration_bounds = array<i64: 1>, scalar_prefetch = 0 : i64, scratch_operands = 0 : i64, tpu.core_type = #tpu.core_type<tc>, window_params = [{transform_indices = @transform_0, window_bounds = array<i64: 16, 128>}, {pipeline_mode = #tpu.pipeline_mode<synchronous>, transform_indices = @transform_1, window_bounds = array<i64: 2, 128, 128>}, {pipeline_mode = #tpu.pipeline_mode<synchronous>, transform_indices = @transform_2, window_bounds = array<i64: 2, 1, 128>}, {pipeline_mode = #tpu.pipeline_mode<synchronous>, transform_indices = @transform_3, window_bounds = array<i64: 128, 128>}, {pipeline_mode = #tpu.pipeline_mode<synchronous>, transform_indices = @transform_4, window_bounds = array<i64: 1, 128>}, {transform_indices = @transform_5, window_bounds = array<i64: 16, 128>}]} {
    %c0 = arith.constant 0 : index
    %c0_0 = arith.constant 0 : index
    %0 = vector.load %arg1[%c0, %c0_0] : memref<16x128xbf16, #tpu.memory_space<vmem>>, vector<16x128xbf16>
    %c0_1 = arith.constant 0 : index
    %c0_2 = arith.constant 0 : index
    %c0_3 = arith.constant 0 : index
    %1 = vector.load %arg2[%c0_1, %c0_2, %c0_3] : memref<2x128x128xbf16, #tpu.memory_space<vmem>>, vector<1x128x128xbf16>
    %2 = vector.shape_cast %1 : vector<1x128x128xbf16> to vector<128x128xbf16>
    %cst = arith.constant dense<0.000000e+00> : vector<16x128xf32>
    %3 = tpu.matmul %0, %2, %cst {dimension_numbers = #tpu.dot_dimension_numbers<[1], [0], [0], [1], [0, 0, 1, 1], [], []>} : vector<16x128xbf16>, vector<128x128xbf16>, vector<16x128xf32> -> vector<16x128xf32>
    %c0_4 = arith.constant 0 : index
    %c0_5 = arith.constant 0 : index
    %c0_6 = arith.constant 0 : index
    %4 = vector.load %arg3[%c0_4, %c0_5, %c0_6] : memref<2x1x128xf32, #tpu.memory_space<vmem>>, vector<1x1x128xf32>
    %5 = vector.shape_cast %4 : vector<1x1x128xf32> to vector<1x128xf32>
    %6 = vector.broadcast %5 : vector<1x128xf32> to vector<16x128xf32>
    %7 = arith.addf %3, %6 : vector<16x128xf32>
    %cst_7 = arith.constant 0.000000e+00 : f32
    %8 = vector.broadcast %cst_7 : f32 to vector<16x128xf32>
    %9 = arith.maximumf %7, %8 : vector<16x128xf32>
    %10 = arith.truncf %9 : vector<16x128xf32> to vector<16x128xbf16>
    %c1 = arith.constant 1 : index
    %c0_8 = arith.constant 0 : index
    %c0_9 = arith.constant 0 : index
    %11 = vector.load %arg2[%c1, %c0_8, %c0_9] : memref<2x128x128xbf16, #tpu.memory_space<vmem>>, vector<1x128x128xbf16>
    %12 = vector.shape_cast %11 : vector<1x128x128xbf16> to vector<128x128xbf16>
    %cst_10 = arith.constant dense<0.000000e+00> : vector<16x128xf32>
    %13 = tpu.matmul %10, %12, %cst_10 {dimension_numbers = #tpu.dot_dimension_numbers<[1], [0], [0], [1], [0, 0, 1, 1], [], []>} : vector<16x128xbf16>, vector<128x128xbf16>, vector<16x128xf32> -> vector<16x128xf32>
    %c1_11 = arith.constant 1 : index
    %c0_12 = arith.constant 0 : index
    %c0_13 = arith.constant 0 : index
    %14 = vector.load %arg3[%c1_11, %c0_12, %c0_13] : memref<2x1x128xf32, #tpu.memory_space<vmem>>, vector<1x1x128xf32>
    %15 = vector.shape_cast %14 : vector<1x1x128xf32> to vector<1x128xf32>
    %16 = vector.broadcast %15 : vector<1x128xf32> to vector<16x128xf32>
    %17 = arith.addf %13, %16 : vector<16x128xf32>
    %cst_14 = arith.constant 0.000000e+00 : f32
    %18 = vector.broadcast %cst_14 : f32 to vector<16x128xf32>
    %19 = arith.maximumf %17, %18 : vector<16x128xf32>
    %20 = arith.truncf %19 : vector<16x128xf32> to vector<16x128xbf16>
    %c0_15 = arith.constant 0 : index
    %c0_16 = arith.constant 0 : index
    %21 = vector.load %arg4[%c0_15, %c0_16] : memref<128x128xbf16, #tpu.memory_space<vmem>>, vector<128x128xbf16>
    %cst_17 = arith.constant dense<0.000000e+00> : vector<16x128xf32>
    %22 = tpu.matmul %20, %21, %cst_17 {dimension_numbers = #tpu.dot_dimension_numbers<[1], [0], [0], [1], [0, 0, 1, 1], [], []>} : vector<16x128xbf16>, vector<128x128xbf16>, vector<16x128xf32> -> vector<16x128xf32>
    %c0_18 = arith.constant 0 : index
    %c0_19 = arith.constant 0 : index
    %23 = vector.load %arg5[%c0_18, %c0_19] : memref<1x128xf32, #tpu.memory_space<vmem>>, vector<1x128xf32>
    %24 = vector.broadcast %23 : vector<1x128xf32> to vector<16x128xf32>
    %25 = arith.addf %22, %24 : vector<16x128xf32>
    %c0_20 = arith.constant 0 : index
    %c0_21 = arith.constant 0 : index
    %26 = vector.load %arg6[%c0_20, %c0_21] : memref<16x128xf32, #tpu.memory_space<vmem>>, vector<16x128xf32>
    tpu.vector_store %arg6[%c0_20, %c0_21], %25 {strides = array<i32>} : memref<16x128xf32, #tpu.memory_space<vmem>>, vector<16x128xf32>,
    return
  }
  func.func @transform_0(%arg0: i32) -> (i32, i32) {
    %c0_i32 = arith.constant 0 : i32
    %c0_i32_0 = arith.constant 0 : i32
    return %arg0, %c0_i32 : i32, i32
  }
  func.func @transform_1(%arg0: i32) -> (i32, i32, i32) {
    %c0_i32 = arith.constant 0 : i32
    %c0_i32_0 = arith.constant 0 : i32
    %c0_i32_1 = arith.constant 0 : i32
    %c0_i32_2 = arith.constant 0 : i32
    return %c0_i32, %c0_i32_0, %c0_i32_1 : i32, i32, i32
  }
  func.func @transform_2(%arg0: i32) -> (i32, i32, i32) {
    %c0_i32 = arith.constant 0 : i32
    %c0_i32_0 = arith.constant 0 : i32
    %c0_i32_1 = arith.constant 0 : i32
    %c0_i32_2 = arith.constant 0 : i32
    return %c0_i32, %c0_i32_0, %c0_i32_1 : i32, i32, i32
  }
  func.func @transform_3(%arg0: i32) -> (i32, i32) {
    %c0_i32 = arith.constant 0 : i32
    %c0_i32_0 = arith.constant 0 : i32
    %c0_i32_1 = arith.constant 0 : i32
    return %c0_i32, %c0_i32_0 : i32, i32
  }
  func.func @transform_4(%arg0: i32) -> (i32, i32) {
    %c0_i32 = arith.constant 0 : i32
    %c0_i32_0 = arith.constant 0 : i32
    %c0_i32_1 = arith.constant 0 : i32
    return %c0_i32, %c0_i32_0 : i32, i32
  }
  func.func @transform_5(%arg0: i32) -> (i32, i32) {
    %c0_i32 = arith.constant 0 : i32
    %c0_i32_0 = arith.constant 0 : i32
    return %arg0, %c0_i32 : i32, i32
  }
}

</mosaic_0001>

<bundles_post_ra>
// kernel: tpu_custom_call.1
= control target key start
LH: loop header
LB: loop body
LE: loop exit
PB: predicated region body
PF: predicated region fallthrough
CT: control target
= control target key end

     0   :  { %10 = vsyncpa [#allocation3], 0  ;;  %s695_s0 = inlined_call_operand.hbm [shape: bf16[16,128], index: 0, kind: input, shape index: {}]   ;;  %s696_s1 = inlined_call_operand.hbm [shape: bf16[2,128,128], index: 1, kind: input, shape index: {}]   ;;  %s697_s2 = inlined_call_operand.hbm [shape: f32[2,1,128], index: 2, kind: input, shape index: {}]   ;;  %s698_s3 = inlined_call_operand.hbm [shape: bf16[128,128], index: 3, kind: input, shape index: {}]   ;;  %s699_s4 = inlined_call_operand.vmem [shape: f32[1,128], index: 4, kind: input, shape index: {}]   ;;  %s700_s5 = inlined_call_operand.hbm [shape: f32[16,128], index: 5, kind: output, shape index: {}]  }
   0x1   :  { %11 = vsyncpa [#allocation6], 0 }
   0x2   :  { %12 = vsyncpa [#allocation9], 0 }
   0x3   :  { %13 = vsyncpa [#allocation4], 0  ;;  %s31_s20 = sshll.u32 %s696_s1, 4  ;;  %s636_s21 = smov [#allocation5]   ;;  %s32_s20 = int_to_ptr.hbm [resolvable:$true] %s31_s20 }
   0x4   :  { %s33_s22 = sshll.u32 %s636_s21, 4  ;;  %s18_s25 = sshll.u32 %s695_s0, 4  ;;  %s34_s22 = int_to_ptr.vmem [resolvable:$true] %s33_s22  ;;  %s19_s25 = int_to_ptr.hbm [resolvable:$true] %s18_s25 }
   0x5   :  { %s637_s26 = smov 64   ;;  %s638_s27 = smov 4  }
   0x6   :  { %39 = dma.hbm_to_vmem [thread:$0]  %s32_s20, 2048, %s34_s22, [#allocation6], %s637_s26, %s637_s26, %s638_s27  }
   0x7   :  { %s639_s28 = smov [#allocation2]   ;;  %s44_s7 = sshll.u32 %s697_s2, 4  ;;  %s45_s7 = int_to_ptr.hbm [resolvable:$true] %s44_s7 }
   0x8   :  { %s20_s29 = sshll.u32 %s639_s28, 4  ;;  %s640_s1 = smov [#allocation7]   ;;  %s21_s29 = int_to_ptr.vmem [resolvable:$true] %s20_s29 }
   0x9   :  { %26 = dma.hbm_to_vmem [thread:$0]  %s19_s25, 128, %s21_s29, [#allocation3], %s637_s26, %s637_s26, %s638_s27  }
   0xa   :  { %s46_s8 = sshll.u32 %s640_s1, 4  ;;  %s57_s0 = sshll.u32 %s698_s3, 4  ;;  %s47_s8 = int_to_ptr.vmem [resolvable:$true] %s46_s8  ;;  %s58_s0 = int_to_ptr.hbm [resolvable:$true] %s57_s0 }
   0xb   :  { %s641_s11 = smov 16   ;;  %s642_s12 = smov 1  }
   0xc   :  { %52 = dma.hbm_to_vmem [thread:$0]  %s45_s7, 32, %s47_s8, [#allocation6], %s641_s11, %s641_s11, %s642_s12  }
   0xd   :  { %s643_s13 = smov [#allocation8]  }
   0xe   :  { %s59_s14 = sshll.u32 %s643_s13, 4  ;;  %s60_s14 = int_to_ptr.vmem [resolvable:$true] %s59_s14 }
   0xf   :  { %65 = dma.hbm_to_vmem [thread:$0]  %s58_s0, 1024, %s60_s14, [#allocation9], %s637_s26, %s637_s26, %s638_s27  }
  0x10   :  { %628 = dma.done.wait [#allocation3], 128  }
  0x11   :  { %629 = vsyncadd [#allocation3], 4294967168 }
  0x12   :  { %630 = dma.done.wait [#allocation6], 2080  }
  0x13   :  { %631 = vsyncadd [#allocation6], 4294965216 }
  0x14   :  { %632 = dma.done.wait [#allocation9], 1024  }
  0x15   :  { %633 = vsyncadd [#allocation9], 4294966272  ;;  %v477_v0 = vld [vmem:[#allocation5 + $0x38] sm:$0xff]  ;;  %v476_v1 = vld [vmem:[#allocation5 + $0x30] sm:$0xff]  ;;  %s644_s15 = smov [#allocation10]   ;;  %s354_s19 = sshll.u32 %s700_s5, 4  ;;  %s355_s19 = int_to_ptr.hbm [resolvable:$true] %s354_s19 }
  0x16   :  { %160 = vmatpush.bf16.msra.mxu0 %v477_v0  ;;  %v485_v2 = vld [vmem:[#allocation5 + $0x78] sm:$0xff]  ;;  %v484_v3 = vld [vmem:[#allocation5 + $0x70] sm:$0xff]  ;;  %v475_v4 = vld [vmem:[#allocation5 + $0x28] sm:$0xff]  ;;  %s352_s16 = sshll.u32 %s644_s15, 4  ;;  %s645_s20 = smov 128   ;;  %s353_s16 = int_to_ptr.vmem [resolvable:$true] %s352_s16 }
  0x17   :  { %247 = vmatpush.bf16.msra.mxu1 %v485_v2  ;;  %v483_v5 = vld [vmem:[#allocation5 + $0x68] sm:$0xff]  ;;  %v474_v6 = vld [vmem:[#allocation5 + $0x20] sm:$0xff]  ;;  %v473_v8 = vld [vmem:[#allocation5 + $0x18] sm:$0xff]  ;;  %s646_s21 = smov 8  }
  0x18   :  { %v482_v7 = vld [vmem:[#allocation5 + $0x60] sm:$0xff]  ;;  %v472_v9 = vld [vmem:[#allocation5 + $0x10] sm:$0xff]  ;;  %v471_v10 = vld [vmem:[#allocation5 + $0x8] sm:$0xff] }
  0x19   :  { %v470_v11 = vld [vmem:[#allocation5] sm:$0xff]  ;;  %v469_v12 = vld [vmem:[#allocation2] sm:$0xff]  ;;  %v480_v14 = vld [vmem:[#allocation5 + $0x50] sm:$0xff] }
  0x1a   :  { %161 = vmatpush.bf16.msra.mxu0 %v476_v1  ;;  %v481_v13 = vld [vmem:[#allocation5 + $0x58] sm:$0xff]  ;;  %v479_v15 = vld [vmem:[#allocation5 + $0x48] sm:$0xff]  ;;  %v478_v16 = vld [vmem:[#allocation5 + $0x40] sm:$0xff] }
  0x1b   :  { %248 = vmatpush.bf16.msra.mxu1 %v484_v3  ;;  %v493_v17 = vld [vmem:[#allocation8 + $0x38] sm:$0xff]  ;;  %v492_v18 = vld [vmem:[#allocation8 + $0x30] sm:$0xff]  ;;  %v491_v19 = vld [vmem:[#allocation8 + $0x28] sm:$0xff] }
  0x1c   :  { %332 = vmatpush.bf16.msra.mxu2 %v493_v17  ;;  %v490_v20 = vld [vmem:[#allocation8 + $0x20] sm:$0xff]  ;;  %v505_v22 = vld [vmem:[#allocation7] ss:$0 sm:$0xff]  ;;  %v488_v30 = vld [vmem:[#allocation8 + $0x10] sm:$0xff] }
  0x1d   :  { %v489_v29 = vld [vmem:[#allocation8 + $0x18] sm:$0xff]  ;;  %v487_v31 = vld [vmem:[#allocation8 + $0x8] sm:$0xff]  ;;  %v486_v32 = vld [vmem:[#allocation8] sm:$0xff] }
  0x1e   :  { %162 = vmatpush.bf16.msra.mxu0 %v475_v4  ;;  %v506_v34 = vld [vmem:[#allocation7 + $0x1] ss:$0 sm:$0xff]  ;;  %v507_v41 = vld [vmem:[%s699_s4] ss:$0 sm:$0xff] }
  0x1f   :  { %249 = vmatpush.bf16.msra.mxu1 %v483_v5 }
  0x20   :  { %333 = vmatpush.bf16.msra.mxu2 %v492_v18 }
  0x22   :  { %163 = vmatpush.bf16.msra.mxu0 %v474_v6 }
  0x23   :  { %250 = vmatpush.bf16.msra.mxu1 %v482_v7 }
  0x24   :  { %334 = vmatpush.bf16.msra.mxu2 %v491_v19 }
  0x26   :  { %164 = vmatpush.bf16.msra.mxu0 %v473_v8 }
  0x27   :  { %251 = vmatpush.bf16.msra.mxu1 %v481_v13 }
  0x28   :  { %335 = vmatpush.bf16.msra.mxu2 %v490_v20 }
  0x2a   :  { %165 = vmatpush.bf16.msra.mxu0 %v472_v9 }
  0x2b   :  { %252 = vmatpush.bf16.msra.mxu1 %v480_v14 }
  0x2c   :  { %336 = vmatpush.bf16.msra.mxu2 %v489_v29 }
  0x2e   :  { %166 = vmatpush.bf16.msra.mxu0 %v471_v10 }
  0x2f   :  { %253 = vmatpush.bf16.msra.mxu1 %v479_v15 }
  0x30   :  { %337 = vmatpush.bf16.msra.mxu2 %v488_v30 }
  0x32   :  { %167 = vmatpush.bf16.msra.mxu0 %v470_v11 }
  0x33   :  { %254 = vmatpush.bf16.msra.mxu1 %v478_v16 }
  0x34   :  { %338 = vmatpush.bf16.msra.mxu2 %v487_v31 }
  0x35   :  { %168 = vmatmul.bf16.vlgmr.msra.gmra.mxu0 %v469_v12 }
  0x38   :  { %339 = vmatpush.bf16.msra.mxu2 %v486_v32 }
  0xb2   :  { %v169_v21 = vpop.f32.mrf.mxu0 }
  0xb3   :  { %v170_v23 = vadd.f32 %v505_v22, %v169_v21 }
  0xb5   :  { %v174_v26 = vmax.f32 %v170_v23, 0.0 }
  0xba   :  { %v171_v24 = vpop.f32.mrf.mxu0 }
  0xbb   :  { %v172_v25 = vadd.f32 %v505_v22, %v171_v24 }
  0xbd   :  { %v175_v27 = vmax.f32 %v172_v25, 0.0 }
  0xbf   :  { %v176_v28 = vpack.c.bf16 %v175_v27, %v174_v26 }
  0xc1   :  { %255 = vmatmul.bf16.vlgmr.msra.gmra.mxu1 %v176_v28 }
 0x13e   :  { %v256_v33 = vpop.f32.mrf.mxu1 }
 0x13f   :  { %v257_v35 = vadd.f32 %v506_v34, %v256_v33 }
 0x141   :  { %v261_v38 = vmax.f32 %v257_v35, 0.0 }
 0x146   :  { %v258_v36 = vpop.f32.mrf.mxu1 }
 0x147   :  { %v259_v37 = vadd.f32 %v506_v34, %v258_v36 }
 0x149   :  { %v262_v39 = vmax.f32 %v259_v37, 0.0 }
 0x14b   :  { %v263_v40 = vpack.c.bf16 %v262_v39, %v261_v38 }
 0x14d   :  { %340 = vmatmul.bf16.vlgmr.msra.gmra.mxu2 %v263_v40 }
 0x1d0   :  { %v341_v42 = vpop.f32.mrf.mxu2 }
 0x1d1   :  { %v342_v43 = vadd.f32 %v507_v41, %v341_v42 }
 0x1d3   :  { %346 = vst [vmem:[#allocation10] sm:$0xff] %v342_v43 }
 0x1d8   :  { %v343_v44 = vpop.f32.mrf.mxu2 }
 0x1d9   :  { %v344_v45 = vadd.f32 %v507_v41, %v343_v44 }
 0x1db   :  { %347 = vst [vmem:[#allocation10 + $0x8] sm:$0xff] %v344_v45 }
 0x1dc   :  { %360 = dma.vmem_to_hbm [thread:$0]  %s353_s16, 256, %s355_s19, [#allocation4], %s645_s20, %s645_s20, %s646_s21  }
 0x1dd   :  { %634 = dma.done.wait [#allocation4], 256  }
 0x1de   :  { %635 = vsyncadd [#allocation4], 4294967040 }
 0x1df   :  { %365 = vsyncpa [#allocation3], 1 }
 0x1e0   :  { %366 = vsyncpa [#allocation6], 1 }
 0x1e1   :  { %367 = vsyncpa [#allocation9], 1 }
 0x1e2   :  { %368 = vsyncpa [#allocation4], 1 }

// kernel: tpu_custom_call.1
= control target key start
LH: loop header
LB: loop body
LE: loop exit
PB: predicated region body
PF: predicated region fallthrough
CT: control target
= control target key end

     0   :  { %10 = vsyncpa [#allocation3], 0  ;;  %s695_s0 = inlined_call_operand.hbm [shape: bf16[16,128], index: 0, kind: input, shape index: {}]   ;;  %s696_s1 = inlined_call_operand.hbm [shape: bf16[2,128,128], index: 1, kind: input, shape index: {}]   ;;  %s697_s2 = inlined_call_operand.hbm [shape: f32[2,1,128], index: 2, kind: input, shape index: {}]   ;;  %s698_s3 = inlined_call_operand.hbm [shape: bf16[128,128], index: 3, kind: input, shape index: {}]   ;;  %s699_s4 = inlined_call_operand.vmem [shape: f32[1,128], index: 4, kind: input, shape index: {}]   ;;  %s700_s5 = inlined_call_operand.hbm [shape: f32[16,128], index: 5, kind: output, shape index: {}]  }
   0x1   :  { %11 = vsyncpa [#allocation6], 0 }
   0x2   :  { %12 = vsyncpa [#allocation9], 0 }
   0x3   :  { %13 = vsyncpa [#allocation4], 0  ;;  %s31_s20 = sshll.u32 %s696_s1, 4  ;;  %s636_s21 = smov [#allocation5]   ;;  %s32_s20 = int_to_ptr.hbm [resolvable:$true] %s31_s20 }
   0x4   :  { %s33_s22 = sshll.u32 %s636_s21, 4  ;;  %s18_s25 = sshll.u32 %s695_s0, 4  ;;  %s34_s22 = int_to_ptr.vmem [resolvable:$true] %s33_s22  ;;  %s19_s25 = int_to_ptr.hbm [resolvable:$true] %s18_s25 }
   0x5   :  { %s637_s26 = smov 64   ;;  %s638_s27 = smov 4  }
   0x6   :  { %39 = dma.hbm_to_vmem [thread:$0]  %s32_s20, 2048, %s34_s22, [#allocation6], %s637_s26, %s637_s26, %s638_s27  }
   0x7   :  { %s639_s28 = smov [#allocation2]   ;;  %s44_s7 = sshll.u32 %s697_s2, 4  ;;  %s45_s7 = int_to_ptr.hbm [resolvable:$true] %s44_s7 }
   0x8   :  { %s20_s29 = sshll.u32 %s639_s28, 4  ;;  %s640_s1 = smov [#allocation7]   ;;  %s21_s29 = int_to_ptr.vmem [resolvable:$true] %s20_s29 }
   0x9   :  { %26 = dma.hbm_to_vmem [thread:$0]  %s19_s25, 128, %s21_s29, [#allocation3], %s637_s26, %s637_s26, %s638_s27  }
   0xa   :  { %s46_s8 = sshll.u32 %s640_s1, 4  ;;  %s57_s0 = sshll.u32 %s698_s3, 4  ;;  %s47_s8 = int_to_ptr.vmem [resolvable:$true] %s46_s8  ;;  %s58_s0 = int_to_ptr.hbm [resolvable:$true] %s57_s0 }
   0xb   :  { %s641_s11 = smov 16   ;;  %s642_s12 = smov 1  }
   0xc   :  { %52 = dma.hbm_to_vmem [thread:$0]  %s45_s7, 32, %s47_s8, [#allocation6], %s641_s11, %s641_s11, %s642_s12  }
   0xd   :  { %s643_s13 = smov [#allocation8]  }
   0xe   :  { %s59_s14 = sshll.u32 %s643_s13, 4  ;;  %s60_s14 = int_to_ptr.vmem [resolvable:$true] %s59_s14 }
   0xf   :  { %65 = dma.hbm_to_vmem [thread:$0]  %s58_s0, 1024, %s60_s14, [#allocation9], %s637_s26, %s637_s26, %s638_s27  }
  0x10   :  { %628 = dma.done.wait [#allocation3], 128  }
  0x11   :  { %629 = vsyncadd [#allocation3], 4294967168 }
  0x12   :  { %630 = dma.done.wait [#allocation6], 2080  }
  0x13   :  { %631 = vsyncadd [#allocation6], 4294965216 }
  0x14   :  { %632 = dma.done.wait [#allocation9], 1024  }
  0x15   :  { %633 = vsyncadd [#allocation9], 4294966272  ;;  %v477_v0 = vld [vmem:[#allocation5 + $0x38] sm:$0xff]  ;;  %v476_v1 = vld [vmem:[#allocation5 + $0x30] sm:$0xff]  ;;  %s644_s15 = smov [#allocation10]   ;;  %s354_s19 = sshll.u32 %s700_s5, 4  ;;  %s355_s19 = int_to_ptr.hbm [resolvable:$true] %s354_s19 }
  0x16   :  { %160 = vmatpush.bf16.msra.mxu0 %v477_v0  ;;  %v485_v2 = vld [vmem:[#allocation5 + $0x78] sm:$0xff]  ;;  %v484_v3 = vld [vmem:[#allocation5 + $0x70] sm:$0xff]  ;;  %v475_v4 = vld [vmem:[#allocation5 + $0x28] sm:$0xff]  ;;  %s352_s16 = sshll.u32 %s644_s15, 4  ;;  %s645_s20 = smov 128   ;;  %s353_s16 = int_to_ptr.vmem [resolvable:$true] %s352_s16 }
  0x17   :  { %247 = vmatpush.bf16.msra.mxu1 %v485_v2  ;;  %v483_v5 = vld [vmem:[#allocation5 + $0x68] sm:$0xff]  ;;  %v474_v6 = vld [vmem:[#allocation5 + $0x20] sm:$0xff]  ;;  %v473_v8 = vld [vmem:[#allocation5 + $0x18] sm:$0xff]  ;;  %s646_s21 = smov 8  }
  0x18   :  { %v482_v7 = vld [vmem:[#allocation5 + $0x60] sm:$0xff]  ;;  %v472_v9 = vld [vmem:[#allocation5 + $0x10] sm:$0xff]  ;;  %v471_v10 = vld [vmem:[#allocation5 + $0x8] sm:$0xff] }
  0x19   :  { %v470_v11 = vld [vmem:[#allocation5] sm:$0xff]  ;;  %v469_v12 = vld [vmem:[#allocation2] sm:$0xff]  ;;  %v480_v14 = vld [vmem:[#allocation5 + $0x50] sm:$0xff] }
  0x1a   :  { %161 = vmatpush.bf16.msra.mxu0 %v476_v1  ;;  %v481_v13 = vld [vmem:[#allocation5 + $0x58] sm:$0xff]  ;;  %v479_v15 = vld [vmem:[#allocation5 + $0x48] sm:$0xff]  ;;  %v478_v16 = vld [vmem:[#allocation5 + $0x40] sm:$0xff] }
  0x1b   :  { %248 = vmatpush.bf16.msra.mxu1 %v484_v3  ;;  %v493_v17 = vld [vmem:[#allocation8 + $0x38] sm:$0xff]  ;;  %v492_v18 = vld [vmem:[#allocation8 + $0x30] sm:$0xff]  ;;  %v491_v19 = vld [vmem:[#allocation8 + $0x28] sm:$0xff] }
  0x1c   :  { %332 = vmatpush.bf16.msra.mxu2 %v493_v17  ;;  %v490_v20 = vld [vmem:[#allocation8 + $0x20] sm:$0xff]  ;;  %v505_v22 = vld [vmem:[#allocation7] ss:$0 sm:$0xff]  ;;  %v488_v30 = vld [vmem:[#allocation8 + $0x10] sm:$0xff] }
  0x1d   :  { %v489_v29 = vld [vmem:[#allocation8 + $0x18] sm:$0xff]  ;;  %v487_v31 = vld [vmem:[#allocation8 + $0x8] sm:$0xff]  ;;  %v486_v32 = vld [vmem:[#allocation8] sm:$0xff] }
  0x1e   :  { %162 = vmatpush.bf16.msra.mxu0 %v475_v4  ;;  %v506_v34 = vld [vmem:[#allocation7 + $0x1] ss:$0 sm:$0xff]  ;;  %v507_v41 = vld [vmem:[%s699_s4] ss:$0 sm:$0xff] }
  0x1f   :  { %249 = vmatpush.bf16.msra.mxu1 %v483_v5 }
  0x20   :  { %333 = vmatpush.bf16.msra.mxu2 %v492_v18 }
  0x22   :  { %163 = vmatpush.bf16.msra.mxu0 %v474_v6 }
  0x23   :  { %250 = vmatpush.bf16.msra.mxu1 %v482_v7 }
  0x24   :  { %334 = vmatpush.bf16.msra.mxu2 %v491_v19 }
  0x26   :  { %164 = vmatpush.bf16.msra.mxu0 %v473_v8 }
  0x27   :  { %251 = vmatpush.bf16.msra.mxu1 %v481_v13 }
  0x28   :  { %335 = vmatpush.bf16.msra.mxu2 %v490_v20 }
  0x2a   :  { %165 = vmatpush.bf16.msra.mxu0 %v472_v9 }
  0x2b   :  { %252 = vmatpush.bf16.msra.mxu1 %v480_v14 }
  0x2c   :  { %336 = vmatpush.bf16.msra.mxu2 %v489_v29 }
  0x2e   :  { %166 = vmatpush.bf16.msra.mxu0 %v471_v10 }
  0x2f   :  { %253 = vmatpush.bf16.msra.mxu1 %v479_v15 }
  0x30   :  { %337 = vmatpush.bf16.msra.mxu2 %v488_v30 }
  0x32   :  { %167 = vmatpush.bf16.msra.mxu0 %v470_v11 }
  0x33   :  { %254 = vmatpush.bf16.msra.mxu1 %v478_v16 }
  0x34   :  { %338 = vmatpush.bf16.msra.mxu2 %v487_v31 }
  0x35   :  { %168 = vmatmul.bf16.vlgmr.msra.gmra.mxu0 %v469_v12 }
  0x38   :  { %339 = vmatpush.bf16.msra.mxu2 %v486_v32 }
  0xb2   :  { %v169_v21 = vpop.f32.mrf.mxu0 }
  0xb3   :  { %v170_v23 = vadd.f32 %v505_v22, %v169_v21 }
  0xb5   :  { %v174_v26 = vmax.f32 %v170_v23, 0.0 }
  0xba   :  { %v171_v24 = vpop.f32.mrf.mxu0 }
  0xbb   :  { %v172_v25 = vadd.f32 %v505_v22, %v171_v24 }
  0xbd   :  { %v175_v27 = vmax.f32 %v172_v25, 0.0 }
  0xbf   :  { %v176_v28 = vpack.c.bf16 %v175_v27, %v174_v26 }
  0xc1   :  { %255 = vmatmul.bf16.vlgmr.msra.gmra.mxu1 %v176_v28 }
 0x13e   :  { %v256_v33 = vpop.f32.mrf.mxu1 }
 0x13f   :  { %v257_v35 = vadd.f32 %v506_v34, %v256_v33 }
 0x141   :  { %v261_v38 = vmax.f32 %v257_v35, 0.0 }
 0x146   :  { %v258_v36 = vpop.f32.mrf.mxu1 }
 0x147   :  { %v259_v37 = vadd.f32 %v506_v34, %v258_v36 }
 0x149   :  { %v262_v39 = vmax.f32 %v259_v37, 0.0 }
 0x14b   :  { %v263_v40 = vpack.c.bf16 %v262_v39, %v261_v38 }
 0x14d   :  { %340 = vmatmul.bf16.vlgmr.msra.gmra.mxu2 %v263_v40 }
 0x1d0   :  { %v341_v42 = vpop.f32.mrf.mxu2 }
 0x1d1   :  { %v342_v43 = vadd.f32 %v507_v41, %v341_v42 }
 0x1d3   :  { %346 = vst [vmem:[#allocation10] sm:$0xff] %v342_v43 }
 0x1d8   :  { %v343_v44 = vpop.f32.mrf.mxu2 }
 0x1d9   :  { %v344_v45 = vadd.f32 %v507_v41, %v343_v44 }
 0x1db   :  { %347 = vst [vmem:[#allocation10 + $0x8] sm:$0xff] %v344_v45 }
 0x1dc   :  { %360 = dma.vmem_to_hbm [thread:$0]  %s353_s16, 256, %s355_s19, [#allocation4], %s645_s20, %s645_s20, %s646_s21  }
 0x1dd   :  { %634 = dma.done.wait [#allocation4], 256  }
 0x1de   :  { %635 = vsyncadd [#allocation4], 4294967040 }
 0x1df   :  { %365 = vsyncpa [#allocation3], 1 }
 0x1e0   :  { %366 = vsyncpa [#allocation6], 1 }
 0x1e1   :  { %367 = vsyncpa [#allocation9], 1 }
 0x1e2   :  { %368 = vsyncpa [#allocation4], 1 }

</bundles_post_ra>
